<compile_context>
chip_gen: v6e
topology: v6e:2x2x1
jax: 0.10.0
libtpu: 0.0.40
codegen_flags: <defaults>
</compile_context>

<pallas_src>
import math

import jax
import jax.numpy as jnp
from jax.experimental import pallas as pl
from jax.experimental.pallas import tpu as pltpu

_LANES = 128
_MAX_BLOCK_ROWS = 1024          # rows-of-128 per grid step (512 KiB/plane, f32)
_DEFAULT_MIN_PALLAS_ROWS = 2048  # below this, let XLA fuse the tiny expression


def _round_up(a, b):
    return ((a + b - 1) // b) * b


def _baselearner_kernel(params_ref, x_ref, y_ref, o_ref):
    # params (SMEM scalars): [wx0, wx1, wx2, wy, by]
    wx0 = params_ref[0]
    wx1 = params_ref[1]
    wx2 = params_ref[2]
    wy = params_ref[3]
    by = params_ref[4]
    # Pure VPU FMAs on full (block_rows, 128) lane-dense tiles; no cross-lane
    # reduction, no masked stores.
    o_ref[...] = (
        x_ref[0] * wx0 + x_ref[1] * wx1 + x_ref[2] * wx2 + y_ref[...] * wy + by
    )


def baselearner_sensor_forward(
    x, y, wx, wy, by, *, block_rows=None, min_pallas_rows=_DEFAULT_MIN_PALLAS_ROWS
):
    """Pallas wrapper reproducing BaseLearnerSensor.forward(x, y)."""
    if x.ndim == 1:                      # matches the PyTorch x.view(1, -1) branch
        x = x.reshape(1, -1)
    x = x.astype(jnp.float32)
    y = jnp.asarray(y, jnp.float32).reshape(-1, 1)
    wx_f = jnp.asarray(wx, jnp.float32).reshape(-1)   # (3,)
    wy_f = jnp.asarray(wy, jnp.float32).reshape(-1)   # (1,)
    by_f = jnp.asarray(by, jnp.float32).reshape(-1)   # (1,)
    n = x.shape[0]

    # Tiny-batch guard: kernel launch + DMA setup dominates, let XLA fuse it.
    if n < min_pallas_rows and block_rows is None:
        return x @ wx_f.reshape(3, 1) + y * wy_f + by_f

    total_rows = -(-n // _LANES)                       # rows of 128 lanes
    if block_rows is None:
        block_rows = min(_MAX_BLOCK_ROWS, _round_up(total_rows, 8))
    assert block_rows % 8 == 0, "block_rows must be a multiple of 8 (sublane tile)"
    padded_rows = _round_up(total_rows, block_rows)
    n_pad = padded_rows * _LANES

    # Lane-dense planes: x -> (3, rows, 128) per-feature planes, y -> (rows, 128).
    x_planes = jnp.pad(x, ((0, n_pad - n), (0, 0))).T.reshape(3, padded_rows, _LANES)
    y_plane = jnp.pad(y, ((0, n_pad - n), (0, 0))).reshape(padded_rows, _LANES)
    params = jnp.concatenate([wx_f, wy_f, by_f])       # (5,) -> SMEM

    grid = (padded_rows // block_rows,)
    out = pl.pallas_call(
        _baselearner_kernel,
        out_shape=jax.ShapeDtypeStruct((padded_rows, _LANES), jnp.float32),
        grid=grid,
        in_specs=[
            pl.BlockSpec(memory_space=pltpu.MemorySpace.SMEM),          # params
            pl.BlockSpec((3, block_rows, _LANES), lambda i: (0, i, 0)),  # x planes
            pl.BlockSpec((block_rows, _LANES), lambda i: (i, 0)),        # y plane
        ],
        out_specs=pl.BlockSpec((block_rows, _LANES), lambda i: (i, 0)),
        compiler_params=pltpu.CompilerParams(
            dimension_semantics=("parallel",),   # v7x: shard grid across both TCs
        ),
    )(params, x_planes, y_plane)

    return out.reshape(n_pad, 1)[:n]


def init_params(key):
    """Deterministic params mirroring the module __init__ (kaiming_uniform_)."""
    kx, ky = jax.random.split(key)
    # fcx.weight: (out=1, in=3); kaiming uniform bound = sqrt(6 / fan_in)
    bx = math.sqrt(6.0 / 3.0)
    wx = jax.random.uniform(kx, (1, 3), jnp.float32, minval=-bx, maxval=bx)
    # fcy.weight: (out=1, in=1)
    by_bound = math.sqrt(6.0 / 1.0)
    wy = jax.random.uniform(ky, (1, 1), jnp.float32, minval=-by_bound, maxval=by_bound)
    # fcy.bias zero-initialized
    by = jnp.zeros((1,), jnp.float32)
    return wx, wy, by


if __name__ == "__main__":
    key = jax.random.PRNGKey(0)
    kp, kx, ky = jax.random.split(key, 3)

    wx, wy, by = init_params(kp)

    # Small, module-consistent shapes; N deliberately not a multiple of 128.
    n = 3000
    x = jax.random.normal(kx, (n, 3), jnp.float32)
    y = jax.random.normal(ky, (n, 1), jnp.float32)

    ref = x @ wx.T + (y @ wy.T + by)

    # Pallas path with a small tile so the grid has several steps (pipelining).
    out = baselearner_sensor_forward(x, y, wx, wy, by, block_rows=8,
                                     min_pallas_rows=0)
    out = jax.block_until_ready(out)
    assert out.shape == (n, 1)
    assert jnp.allclose(out, ref, atol=1e-5, rtol=1e-5)

    # Pallas path with the auto-chosen tile size.
    out2 = jax.block_until_ready(
        baselearner_sensor_forward(x, y, wx, wy, by, min_pallas_rows=0)
    )
    assert jnp.allclose(out2, ref, atol=1e-5, rtol=1e-5)

    # 1-D x branch (PyTorch x.view(1, -1) path); tiny N takes the fused fallback.
    out1 = jax.block_until_ready(
        baselearner_sensor_forward(x[0], y[:1], wx, wy, by)
    )
    assert out1.shape == (1, 1)
    assert jnp.allclose(out1, ref[:1], atol=1e-5, rtol=1e-5)

    print("KERNEL_OK")
</pallas_src>

<mosaic_0001>
module attributes {stable_mosaic.version = 11 : i64} {
  func.func @_baselearner_kernel(%arg0: i32, %arg1: memref<5xf32, #tpu.memory_space<smem>>, %arg2: memref<3x8x128xf32, #tpu.memory_space<vmem>>, %arg3: memref<8x128xf32, #tpu.memory_space<vmem>>, %arg4: memref<8x128xf32, #tpu.memory_space<vmem>>) attributes {dimension_semantics = [#tpu.dimension_semantics<parallel>], iteration_bounds = array<i64: 3>, scalar_prefetch = 0 : i64, scratch_operands = 0 : i64, tpu.core_type = #tpu.core_type<tc>, window_params = [{transform_indices = @transform_0, window_bounds = array<i64: 5>}, {transform_indices = @transform_1, window_bounds = array<i64: 3, 8, 128>}, {transform_indices = @transform_2, window_bounds = array<i64: 8, 128>}, {transform_indices = @transform_3, window_bounds = array<i64: 8, 128>}]} {
    %c0 = arith.constant 0 : index
    %0 = memref.load %arg1[%c0] : memref<5xf32, #tpu.memory_space<smem>>
    %c1 = arith.constant 1 : index
    %1 = memref.load %arg1[%c1] : memref<5xf32, #tpu.memory_space<smem>>
    %c2 = arith.constant 2 : index
    %2 = memref.load %arg1[%c2] : memref<5xf32, #tpu.memory_space<smem>>
    %c3 = arith.constant 3 : index
    %3 = memref.load %arg1[%c3] : memref<5xf32, #tpu.memory_space<smem>>
    %c4 = arith.constant 4 : index
    %4 = memref.load %arg1[%c4] : memref<5xf32, #tpu.memory_space<smem>>
    %c0_0 = arith.constant 0 : index
    %c0_1 = arith.constant 0 : index
    %c0_2 = arith.constant 0 : index
    %5 = vector.load %arg2[%c0_0, %c0_1, %c0_2] : memref<3x8x128xf32, #tpu.memory_space<vmem>>, vector<1x8x128xf32>
    %6 = vector.shape_cast %5 : vector<1x8x128xf32> to vector<8x128xf32>
    %7 = vector.broadcast %0 : f32 to vector<8x128xf32>
    %8 = arith.mulf %6, %7 : vector<8x128xf32>
    %c1_3 = arith.constant 1 : index
    %c0_4 = arith.constant 0 : index
    %c0_5 = arith.constant 0 : index
    %9 = vector.load %arg2[%c1_3, %c0_4, %c0_5] : memref<3x8x128xf32, #tpu.memory_space<vmem>>, vector<1x8x128xf32>
    %10 = vector.shape_cast %9 : vector<1x8x128xf32> to vector<8x128xf32>
    %11 = vector.broadcast %1 : f32 to vector<8x128xf32>
    %12 = arith.mulf %10, %11 : vector<8x128xf32>
    %13 = arith.addf %8, %12 : vector<8x128xf32>
    %c2_6 = arith.constant 2 : index
    %c0_7 = arith.constant 0 : index
    %c0_8 = arith.constant 0 : index
    %14 = vector.load %arg2[%c2_6, %c0_7, %c0_8] : memref<3x8x128xf32, #tpu.memory_space<vmem>>, vector<1x8x128xf32>
    %15 = vector.shape_cast %14 : vector<1x8x128xf32> to vector<8x128xf32>
    %16 = vector.broadcast %2 : f32 to vector<8x128xf32>
    %17 = arith.mulf %15, %16 : vector<8x128xf32>
    %18 = arith.addf %13, %17 : vector<8x128xf32>
    %c0_9 = arith.constant 0 : index
    %c0_10 = arith.constant 0 : index
    %19 = vector.load %arg3[%c0_9, %c0_10] : memref<8x128xf32, #tpu.memory_space<vmem>>, vector<8x128xf32>
    %20 = vector.broadcast %3 : f32 to vector<8x128xf32>
    %21 = arith.mulf %19, %20 : vector<8x128xf32>
    %22 = arith.addf %18, %21 : vector<8x128xf32>
    %23 = vector.broadcast %4 : f32 to vector<8x128xf32>
    %24 = arith.addf %22, %23 : vector<8x128xf32>
    %c0_11 = arith.constant 0 : index
    %c0_12 = arith.constant 0 : index
    %25 = vector.load %arg4[%c0_11, %c0_12] : memref<8x128xf32, #tpu.memory_space<vmem>>, vector<8x128xf32>
    tpu.vector_store %arg4[%c0_11, %c0_12], %24 {strides = array<i32>} : memref<8x128xf32, #tpu.memory_space<vmem>>, vector<8x128xf32>,
    return
  }
  func.func @transform_0(%arg0: i32) -> i32 {
    %c0_i32 = arith.constant 0 : i32
    %c0_i32_0 = arith.constant 0 : i32
    return %c0_i32 : i32
  }
  func.func @transform_1(%arg0: i32) -> (i32, i32, i32) {
    %c0_i32 = arith.constant 0 : i32
    %c0_i32_0 = arith.constant 0 : i32
    %c0_i32_1 = arith.constant 0 : i32
    return %c0_i32, %arg0, %c0_i32_0 : i32, i32, i32
  }
  func.func @transform_2(%arg0: i32) -> (i32, i32) {
    %c0_i32 = arith.constant 0 : i32
    %c0_i32_0 = arith.constant 0 : i32
    return %arg0, %c0_i32 : i32, i32
  }
  func.func @transform_3(%arg0: i32) -> (i32, i32) {
    %c0_i32 = arith.constant 0 : i32
    %c0_i32_0 = arith.constant 0 : i32
    return %arg0, %c0_i32 : i32, i32
  }
}

</mosaic_0001>

<bundles_post_ra>
// kernel: tpu_custom_call.1
= control target key start
LH: loop header
LB: loop body
LE: loop exit
PB: predicated region body
PF: predicated region fallthrough
CT: control target
= control target key end

     0   :  { %s844_s0 = inlined_call_operand.hbm [shape: f32[5], index: 0, kind: input, shape index: {}]   ;;  %s845_s1 = inlined_call_operand.hbm [shape: f32[3,24,128], index: 1, kind: input, shape index: {}]   ;;  %s846_s2 = inlined_call_operand.hbm [shape: f32[24,128], index: 2, kind: input, shape index: {}]   ;;  %s847_s3 = inlined_call_operand.hbm [shape: f32[24,128], index: 3, kind: output, shape index: {}]  }
   0x1   :  { %852 = sst [smem:[#allocation14_spill]] %s844_s0 }
   0x2   :  { %8 = vsyncpa [#allocation5], 0 }
   0x3   :  { %9 = vsyncpa [#allocation3], 0 }
   0x4   :  { %11 = vsyncpa [#allocation3 + $0x1], 0 }
   0x5   :  { %12 = vsyncpa [#allocation8], 0 }
   0x6   :  { %14 = vsyncpa [#allocation8 + $0x1], 0 }
   0x7   :  { %15 = vsyncpa [#allocation4], 0 }
   0x8   :  { %17 = vsyncpa [#allocation4 + $0x1], 0  ;;  %s637_s12 = smov 0   ;;  %s639_s13 = smov 0  }
   0x9   :  { %s641_s14 = smov 0   ;;  %s643_s15 = smov 0  }
   0xa LB: > { %s658_s16 = sadd.s32 4294967295, %s608_s15   ;;  %s381_s17 = sadd.s32 4294967294, %s608_s15   ;;  %s608_s15 = sphi %s643_s15, %s869_s15   ;;  %s604_s14 = sphi %s641_s14, %s868_s14   ;;  %s600_s13 = sphi %s639_s13, %s867_s13   ;;  %s596_s12 = sphi %s637_s12, %s866_s12  }
   0xb   : > { %s662_s18 = sadd.s32 1, %s608_s15   ;;  %s51_s19 = sadd.s32 1, %s604_s14 }
   0xc   : > { %s48_s20 = ssub.s32 %s608_s15, %s662_s18  ;;  %p58_p0 = scmp.ne.s32.totalorder %s604_s14, %s600_s13 }
   0xd   : > { %p49_p1 = scmp.eq.s32.totalorder %s48_s20, 0  ;;  %p59_p2 = scmp.eq.s32.totalorder %s608_s15, 0 }
   0xe   : > { %p64_p3 = scmp.ne.s32.totalorder %s600_s13, %s596_s12  ;;  %p848_p4 = scmp.eq.s32.totalorder %s658_s16, 0 }
   0xf   : > { %s674_s21 = scalar_select %p49_p1, %s604_s14, %s51_s19  }
  0x10   : > { %p676_p5 = por %p59_p2, %p58_p0  ;;  %p682_p6 = por %p848_p4, %p64_p3 }
  0x11   : > { %p114_p7 = scmp.eq.s32.totalorder %s658_s16, 2  ;;  %p120_p8 = scmp.eq.s32.totalorder %s381_s17, 2 }
  0x12   : > { %s854_s23 = scalar_select %p682_p6, 1, 0 }
  0x13   : > { %p382_p9 = scmp.ge.s32.totalorder %s608_s15, 1  ;;  %p127_p10 = scmp.lt.s32.totalorder %s608_s15, 4 }
  0x14   : > { %p689_p11 = por %p114_p7, %p58_p0  ;;  %p693_p12 = por %p120_p8, %p64_p3 }
  0x15   : > { %p697_p13 = pnand %p382_p9, %p127_p10  ;;  %p430_p2 = scmp.lt.s32.totalorder %s608_s15, 3 }
  0x16   : > { %s855_s24 = scalar_select %p689_p11, 1, 0 }
  0x17   : > { %s856_s25 = scalar_select %p693_p12, 1, 0 }
  0x18   : > { %s857_s26 = scalar_select %p697_p13, 1, 0 }
  0x19   : > { %p414_p1 = pneg %p697_p13  ;;  %s705_s27 = sand.u32 1, %s604_s14  }
  0x1a   : > { %s385_s28 = sshll.u32 %s608_s15, 7  ;;  %p712_p3 = pnand %p430_p2, %p676_p5 }
  0x1b   : > { %p415_p0 = pnand %p414_p1, %p848_p4  ;;  %s402_s30 = smul.u32 24, %s705_s27 }
  0x1c   : > { %s610_s4 = smov [#allocation2]   ;;  %s859_s0 = sld [smem:[#allocation14_spill]] }
  0x1d   : > { %s725_s9 = scalar_lea.hbm %s845_s1, %s385_s28  ;;  %s153_s10 = scalar_lea.vmem [#allocation6], %s402_s30 }
  0x1e   : > { %s159_s11 = sshll.u32 %s153_s10, 4  ;;  %s150_s17 = scalar_lea.sflag [#allocation3], %s705_s27  ;;  %s727_s11 = int_to_ptr.vmem [resolvable:$true] %s159_s11 }
  0x1f   : > { %s480_s19 = scalar_lea.hbm %s725_s9, 384  ;;  %p482_p7 = pneg %p712_p3 }
  0x20   : > { %p481_p5 = scmp.ne.s32.totalorder %s725_s9, %s480_s19  ;;  %p486_p10 = scmp.lt.s32.totalorder %s725_s9, %s845_s1 }
  0x22   : > { %417 = dma.hbm_to_smem (!%p415_p0), %s859_s0, 16, %s610_s4, [#allocation5]  }
  0x23   : > { %p483_p8 = pnand %p482_p7, %p481_p5  ;;  %s485_s4 = scalar_lea.hbm %s845_s1, 1152 }
  0x24   : > { %p487_p1 = scmp.lt.s32.totalorder %s485_s4, %s480_s19 }
  0x25   : > { %p484_p9 = pneg %p483_p8 }
  0x26   : > { %p488_p2 = por %p487_p1, %p486_p10 }
  0x28   : > { %p489_p0 = pnand %p488_p2, %p484_p9 }
  0x2a   : > { %492 = shalt.err (!%p489_p0)
}
  0x2b   : > { %s493_s30 = scalar_lea.vmem %s727_s11, 384  ;;  %s611_s7 = smov [#allocation6]  }
  0x2c   : > { %p494_p4 = scmp.ne.s32.totalorder %s727_s11, %s493_s30  ;;  %s498_s8 = sshll.u32 %s611_s7, 4  ;;  %s499_s8 = int_to_ptr.vmem [resolvable:$false] %s498_s8 }
  0x2d   : > { %s500_s10 = scalar_lea.vmem %s499_s8, 768  ;;  %p501_p12 = scmp.lt.s32.totalorder %s727_s11, %s499_s8 }
  0x2e   : > { %p496_p5 = pnand %p494_p4, %p482_p7  ;;  %p502_p11 = scmp.lt.s32.totalorder %s500_s10, %s493_s30 }
  0x30   : > { %p497_p8 = pneg %p496_p5  ;;  %p503_p6 = por %p502_p11, %p501_p12 }
  0x32   : > { %p504_p10 = pnand %p503_p6, %p497_p8 }
  0x34   : > { %507 = shalt.err (!%p504_p10)
}
  0x35   : > { %s612_s19 = smov 384   ;;  %s613_s20 = smov 128  }
  0x36   : > { %s614_s22 = smov 8   ;;  %s386_s4 = sshll.u32 %s705_s27, 3 }
  0x37   : > { %421 = dma.hbm_to_vmem [thread:$0]  (!%p712_p3), %s725_s9, 384, %s727_s11, %s150_s17, %s612_s19, %s613_s20, %s614_s22  }
  0x38   : > { %s762_s30 = scalar_lea.hbm %s846_s2, %s385_s28  ;;  %s173_s7 = scalar_lea.vmem [#allocation7], %s386_s4 }
  0x39   : > { %s180_s8 = sshll.u32 %s173_s7, 4  ;;  %s170_s10 = scalar_lea.sflag [#allocation8], %s705_s27  ;;  %s181_s8 = int_to_ptr.vmem [resolvable:$true] %s180_s8 }
  0x3a   : > { %s508_s0 = scalar_lea.hbm %s762_s30, 128  ;;  %s513_s17 = scalar_lea.hbm %s846_s2, 384 }
  0x3b   : > { %p509_p4 = scmp.ne.s32.totalorder %s762_s30, %s508_s0  ;;  %p514_p12 = scmp.lt.s32.totalorder %s762_s30, %s846_s2 }
  0x3c   : > { %p515_p9 = scmp.lt.s32.totalorder %s513_s17, %s508_s0 }
  0x3d   : > { %p511_p6 = pnand %p509_p4, %p482_p7 }
  0x3e   : > { %p516_p1 = por %p515_p9, %p514_p12 }
  0x3f   : > { %p512_p11 = pneg %p511_p6 }
  0x41   : > { %p517_p2 = pnand %p516_p1, %p512_p11 }
  0x43   : > { %520 = shalt.err (!%p517_p2)
}
  0x44   : > { %s521_s20 = scalar_lea.vmem %s181_s8, 128  ;;  %s615_s27 = smov [#allocation7]  }
  0x45   : > { %p522_p0 = scmp.ne.s32.totalorder %s181_s8, %s521_s20  ;;  %s526_s22 = sshll.u32 %s615_s27, 4  ;;  %s527_s22 = int_to_ptr.vmem [resolvable:$false] %s526_s22 }
  0x46   : > { %s528_s4 = scalar_lea.vmem %s527_s22, 256  ;;  %p529_p10 = scmp.lt.s32.totalorder %s181_s8, %s527_s22 }
  0x47   : > { %p524_p5 = pnand %p522_p0, %p482_p7  ;;  %p530_p4 = scmp.lt.s32.totalorder %s528_s4, %s521_s20 }
  0x49   : > { %p525_p8 = pneg %p524_p5  ;;  %p531_p6 = por %p530_p4, %p529_p10 }
  0x4b   : > { %p532_p13 = pnand %p531_p6, %p525_p8 }
  0x4d   : > { %535 = shalt.err (!%p532_p13)
}
  0x4e   : > { %424 = dma.hbm_to_vmem [thread:$0]  (!%p712_p3), %s762_s30, 128, %s181_s8, %s170_s10  }
  0x4f   : > { %p860_p11 = scmp.ne.s32.totalorder %s857_s26, 0 }
  0x50   : > { %p861_p12 = scmp.eq.s32.totalorder (!%p860_p11), %s658_s16, 0 }
  0x51   : > { %189 = sbr.rel (%p860_p11) target bundleno = 128 (0x80), region = 32 }
  0x56   : > { %579 = dma.done.wait (%p861_p12), [#allocation5], 16   ;;  %p862_p7 = pmov %p861_p12 }
  0x57   : > { %s790_s0 = sand.u32 1, %s600_s13   ;;  %p863_p13 = scmp.ne.s32.totalorder %s854_s23, 0 }
  0x58   : > { %581 = vsyncadd (%p862_p7), [#allocation5], 4294967280  ;;  %s403_s5 = smul.u32 24, %s790_s0  ;;  %s196_s6 = scalar_lea.sflag [#allocation3], %s790_s0 }
  0x5a   : > { %s199_s29 = scalar_lea.vmem [#allocation6], %s403_s5 }
  0x5b   : > { %583 = dma.done.wait (%p863_p13), %s196_s6, 384  }
  0x5c   : > { %585 = vsyncadd (%p863_p13), %s196_s6, 4294966912  ;;  %s390_s26 = sshll.u32 %s790_s0, 3  ;;  %s205_s30 = scalar_lea.sflag [#allocation8], %s790_s0 }
  0x5d   : > { %s208_s7 = scalar_lea.vmem [#allocation7], %s390_s26 }
  0x5e   : > { %587 = dma.done.wait (%p863_p13), %s205_s30, 128  }
  0x5f   : > { %589 = vsyncadd (%p863_p13), %s205_s30, 4294967168 }
  0x60   : > { %213 = sfence }
  0x61   : > { %s237_s8 = sld [smem:[#allocation2]]  ;;  %v242_v0 = vld [vmem:[%s199_s29] sm:$0xff]  ;;  %v396_v1 = vld [vmem:[%s199_s29 + $0x8] sm:$0xff]  ;;  %v397_v3 = vld [vmem:[%s199_s29 + $0x10] sm:$0xff]  ;;  %s236_s23 = scalar_lea.vmem [#allocation9], %s390_s26 }
  0x62   : > { %s392_s10 = sld [smem:[#allocation2 + $0x1]]  ;;  %v255_v6 = vld [vmem:[%s208_s7] sm:$0xff]  ;;  %s276_s19 = sshll.u32 %s236_s23, 4  ;;  %s805_s19 = int_to_ptr.vmem [resolvable:$true] %s276_s19 }
  0x63   : > { %s393_s9 = sld [smem:[#allocation2 + $0x2]]  ;;  %s399_s28 = sshll.u32 %s658_s16, 7 }
  0x64   : > { %s394_s11 = sld [smem:[#allocation2 + $0x3]]  ;;  %s274_s22 = scalar_lea.hbm %s847_s3, %s399_s28 }
  0x65   : > { %s395_s17 = sld [smem:[#allocation2 + $0x4]]  ;;  %s263_s4 = scalar_lea.sflag [#allocation4], %s790_s0 }
  0x66   : > { %s536_s5 = scalar_lea.vmem %s805_s19, 128  ;;  %p864_p9 = scmp.ne.s32.totalorder %s855_s24, 0 }
  0x67   : > { %v243_v2 = vstv %s237_s8  ;;  %p537_p3 = scmp.ne.s32.totalorder %s805_s19, %s536_s5  ;;  %s616_s6 = smov [#allocation9]  }
  0x68   : > { %v244_v4 = vmul.f32 %v243_v2, %v242_v0  ;;  %v247_v5 = vstv %s392_s10  ;;  %s540_s16 = sshll.u32 %s616_s6, 4  ;;  %s541_s16 = int_to_ptr.vmem [resolvable:$false] %s540_s16 }
  0x69   : > { %v248_v7 = vmul.f32 %v396_v1, %v247_v5  ;;  %v252_v8 = vstv %s393_s9  ;;  %p538_p1 = pnand %p537_p3, %p864_p9  ;;  %s542_s29 = scalar_lea.vmem %s541_s16, 256 }
  0x6a   : > { %v253_v9 = vmul.f32 %v397_v3, %v252_v8  ;;  %v256_v10 = vstv %s394_s11  ;;  %p543_p0 = scmp.lt.s32.totalorder %s805_s19, %s541_s16  ;;  %p544_p5 = scmp.lt.s32.totalorder %s542_s29, %s536_s5 }
  0x6b   : > { %v249_v11 = vadd.f32 %v248_v7, %v244_v4  ;;  %v257_v12 = vmul.f32 %v256_v10, %v255_v6  ;;  %v259_v14 = vstv %s395_s17  ;;  %p539_p2 = pneg %p538_p1 }
  0x6c   : > { %p545_p8 = por %p544_p5, %p543_p0 }
  0x6d   : > { %v254_v13 = vadd.f32 %v253_v9, %v249_v11 }
  0x6e   : > { %p546_p10 = pnand %p545_p8, %p539_p2 }
  0x6f   : > { %v258_v15 = vadd.f32 %v257_v12, %v254_v13 }
  0x71   : > { %v260_v16 = vadd.f32 %v259_v14, %v258_v15 }
  0x73   : > { %261 = vst [vmem:[%s236_s23] sm:$0xff] %v260_v16 }
  0x74   : > { %549 = shalt.err (!%p546_p10)
}
  0x75   : > { %s550_s26 = scalar_lea.hbm %s274_s22, 128  ;;  %s554_s7 = scalar_lea.hbm %s847_s3, 384 }
  0x76   : > { %p551_p4 = scmp.ne.s32.totalorder %s274_s22, %s550_s26  ;;  %p555_p12 = scmp.lt.s32.totalorder %s274_s22, %s847_s3 }
  0x77   : > { %p556_p7 = scmp.lt.s32.totalorder %s554_s7, %s550_s26 }
  0x78   : > { %p552_p6 = pnand %p551_p4, %p864_p9 }
  0x79   : > { %p557_p13 = por %p556_p7, %p555_p12 }
  0x7a   : > { %p553_p11 = pneg %p552_p6 }
  0x7c   : > { %p558_p3 = pnand %p557_p13, %p553_p11 }
  0x7e   : > { %561 = shalt.err (!%p558_p3)
}
  0x7f   : > { %412 = dma.vmem_to_hbm [thread:$0]  (%p864_p9), %s805_s19, 128, %s274_s22, %s263_s4  }
  0x80 PF: > { %p432_p1 = scmp.ge.s32.totalorder %s608_s15, 2  ;;  %s288_s9 = sand.u32 1, %s596_s12  }
  0x81   : > { %p865_p2 = scmp.ne.s32.totalorder %s856_s25, 0  ;;  %s289_s11 = scalar_lea.sflag [#allocation4], %s288_s9 }
  0x83   : > { %p426_p0 = pnand %p432_p1, %p865_p2 }
  0x85   : > { %p427_p5 = pneg %p426_p0 }
  0x87   : > { %591 = dma.done.wait (%p427_p5), %s289_s11, 128  }
  0x88   : > { %593 = vsyncadd (%p427_p5), %s289_s11, 4294967168  ;;  %p20_p8 = scmp.ge.s32.totalorder %s662_s18, 5   ;;  %s866_s12 = smov %s600_s13 }
  0x89   : > { %s867_s13 = smov %s604_s14  ;;  %s868_s14 = smov %s674_s21 }
  0x8a   : > { %s869_s15 = smov %s662_s18  ;;  %22 = sbr.rel (!%p20_p8) target bundleno = 10 (0xa), region = 97 }
  0x8f   :  { %294 = vsyncpa [#allocation3], 1 }
  0x90   :  { %296 = vsyncpa [#allocation3 + $0x1], 1 }
  0x91   :  { %297 = vsyncpa [#allocation8], 1 }
  0x92   :  { %299 = vsyncpa [#allocation8 + $0x1], 1 }
  0x93   :  { %300 = vsyncpa [#allocation4], 1 }
  0x94   :  { %302 = vsyncpa [#allocation4 + $0x1], 1 }
  0x95   :  { %303 = vsyncpa [#allocation5], 1 }
  0x96   :  { %305 = vsyncpa [#allocation5 + $0x1], 1 }

</bundles_post_ra>
